<compile_context>
chip_gen: v5e
topology: v5e:2x2
jax: 0.10.0
libtpu: 0.0.40
codegen_flags: <defaults>
</compile_context>

<pallas_src>
import functools

import jax
import jax.numpy as jnp
from jax.experimental import pallas as pl
from jax.experimental.pallas import tpu as pltpu


def _modulation_kernel(vec_ref, w_ref, b_ref, out_ref):
    # SiLU on the small resident activation block (fp32 for the sigmoid).
    x = vec_ref[...].astype(jnp.float32)
    x = x * jax.nn.sigmoid(x)                     # SiLU, EUP+VPU: free filler
    # Matmul in the weight's native dtype (no fp32 upcast of the weight tile),
    # accumulate in fp32 on the MXU.
    y = jnp.dot(x.astype(w_ref.dtype), w_ref[...],
                preferred_element_type=jnp.float32)
    y = y + b_ref[...].astype(jnp.float32)        # broadcast [1, TILE_N]
    out_ref[...] = y.astype(out_ref.dtype)


def _pick_tile_n(out_dim, target=2048):
    """Largest multiple of 128 <= target that divides out_dim, else out_dim."""
    if out_dim <= target:
        return out_dim
    t = (target // 128) * 128
    while t >= 128:
        if out_dim % t == 0:
            return t
        t -= 128
    return out_dim


@functools.partial(jax.jit, static_argnames=("multiplier",))
def modulation_forward(vec, weight_t, bias, multiplier):
    """vec: [B, dim], weight_t: [dim, mult*dim] (pre-transposed nn.Linear
    weight), bias: [mult*dim].

    Returns a tuple of `multiplier` arrays, each [B, 1, dim].
    """
    B, dim = vec.shape
    out_dim = multiplier * dim
    assert weight_t.shape == (dim, out_dim)
    assert bias.shape == (out_dim,)

    bias2d = bias.reshape(1, out_dim)

    tile_n = _pick_tile_n(out_dim)
    n_tiles = pl.cdiv(out_dim, tile_n)

    # VMEM budget: double-buffered weight tile dominates; cap under v7x's
    # 64 MiB physical VMEM.
    vmem_bytes = (
        2 * (dim * tile_n * weight_t.dtype.itemsize
             + B * tile_n * vec.dtype.itemsize
             + tile_n * bias.dtype.itemsize)
        + 2 * B * dim * vec.dtype.itemsize
        + (2 << 20)  # slack
    )
    vmem_limit = int(min(max(vmem_bytes, 16 << 20), 64 << 20))

    y = pl.pallas_call(
        _modulation_kernel,
        out_shape=jax.ShapeDtypeStruct((B, out_dim), vec.dtype),
        grid=(n_tiles,),
        in_specs=[
            # Activations: resident across all N steps.
            pl.BlockSpec((B, dim), lambda j: (0, 0)),
            # Weight: streamed HBM->VMEM, one N tile per grid step.
            pl.BlockSpec((dim, tile_n), lambda j: (0, j)),
            # Bias: one N tile per grid step.
            pl.BlockSpec((1, tile_n), lambda j: (0, j)),
        ],
        out_specs=pl.BlockSpec((B, tile_n), lambda j: (0, j)),
        compiler_params=pltpu.CompilerParams(
            dimension_semantics=("parallel",),
            vmem_limit_bytes=vmem_limit,
        ),
    )(vec, weight_t, bias2d)

    # Lane-dense slab -> [B, mult, dim] (free reshape), then cheap per-chunk
    # slices matching .chunk(mult, dim=-1) on [B, 1, mult*dim].
    y3 = y.reshape(B, multiplier, dim)
    return tuple(y3[:, i:i + 1, :] for i in range(multiplier))


if __name__ == "__main__":
    key = jax.random.PRNGKey(0)
    B, dim = 2, 32
    double = True
    multiplier = 6 if double else 3

    k_vec, k_w, k_b = jax.random.split(key, 3)
    vec = jax.random.normal(k_vec, (B, dim), dtype=jnp.float32)

    # Deterministic synthetic parameters (nn.Linear conventions:
    # weight [out, in] -> stored transposed [in, out]; bias [out]).
    bound = 1.0 / (dim ** 0.5)
    weight = jax.random.uniform(k_w, (multiplier * dim, dim),
                                minval=-bound, maxval=bound, dtype=jnp.float32)
    bias = jax.random.uniform(k_b, (multiplier * dim,),
                              minval=-bound, maxval=bound, dtype=jnp.float32)
    weight_t = weight.T  # [dim, mult*dim]

    outs = modulation_forward(vec, weight_t, bias, multiplier)
    outs = jax.block_until_ready(outs)

    # Sanity check against a pure-JAX reference.
    x = vec * jax.nn.sigmoid(vec)
    ref = (x @ weight_t + bias)[:, None, :]
    ref_chunks = jnp.split(ref, multiplier, axis=-1)
    for o, r in zip(outs, ref_chunks):
        assert o.shape == (B, 1, dim)
        assert jnp.allclose(o, r, atol=1e-5, rtol=1e-5)

    print("KERNEL_OK")
</pallas_src>

<mosaic_0001>
module attributes {stable_mosaic.version = 11 : i64} {
  func.func @_modulation_kernel(%arg0: i32, %arg1: memref<2x32xf32, #tpu.memory_space<vmem>>, %arg2: memref<32x192xf32, #tpu.memory_space<vmem>>, %arg3: memref<1x192xf32, #tpu.memory_space<vmem>>, %arg4: memref<2x192xf32, #tpu.memory_space<vmem>>) attributes {dimension_semantics = [#tpu.dimension_semantics<parallel>], iteration_bounds = array<i64: 1>, scalar_prefetch = 0 : i64, scratch_operands = 0 : i64, tpu.core_type = #tpu.core_type<tc>, window_params = [{pipeline_mode = #tpu.pipeline_mode<synchronous>, transform_indices = @transform_0, window_bounds = array<i64: 2, 32>}, {transform_indices = @transform_1, window_bounds = array<i64: 32, 192>}, {transform_indices = @transform_2, window_bounds = array<i64: 1, 192>}, {transform_indices = @transform_3, window_bounds = array<i64: 2, 192>}]} {
    %c0 = arith.constant 0 : index
    %c0_0 = arith.constant 0 : index
    %0 = vector.load %arg1[%c0, %c0_0] : memref<2x32xf32, #tpu.memory_space<vmem>>, vector<2x32xf32>
    %1 = arith.negf %0 : vector<2x32xf32>
    %2 = math.exp %1 : vector<2x32xf32>
    %cst = arith.constant 1.000000e+00 : f32
    %3 = vector.broadcast %cst : f32 to vector<2x32xf32>
    %4 = arith.addf %3, %2 : vector<2x32xf32>
    %5 = arith.divf %3, %4 : vector<2x32xf32>
    %6 = arith.mulf %0, %5 : vector<2x32xf32>
    %c0_1 = arith.constant 0 : index
    %c0_2 = arith.constant 0 : index
    %7 = vector.load %arg2[%c0_1, %c0_2] : memref<32x192xf32, #tpu.memory_space<vmem>>, vector<32x192xf32>
    %cst_3 = arith.constant dense<0.000000e+00> : vector<2x192xf32>
    %8 = tpu.matmul %6, %7, %cst_3 {dimension_numbers = #tpu.dot_dimension_numbers<[1], [0], [0], [1], [0, 0, 1, 1], [], []>} : vector<2x32xf32>, vector<32x192xf32>, vector<2x192xf32> -> vector<2x192xf32>
    %c0_4 = arith.constant 0 : index
    %c0_5 = arith.constant 0 : index
    %9 = vector.load %arg3[%c0_4, %c0_5] : memref<1x192xf32, #tpu.memory_space<vmem>>, vector<1x192xf32>
    %10 = vector.broadcast %9 : vector<1x192xf32> to vector<2x192xf32>
    %11 = arith.addf %8, %10 : vector<2x192xf32>
    %c0_6 = arith.constant 0 : index
    %c0_7 = arith.constant 0 : index
    %12 = vector.load %arg4[%c0_6, %c0_7] : memref<2x192xf32, #tpu.memory_space<vmem>>, vector<2x192xf32>
    tpu.vector_store %arg4[%c0_6, %c0_7], %11 {strides = array<i32>} : memref<2x192xf32, #tpu.memory_space<vmem>>, vector<2x192xf32>,
    return
  }
  func.func @transform_0(%arg0: i32) -> (i32, i32) {
    %c0_i32 = arith.constant 0 : i32
    %c0_i32_0 = arith.constant 0 : i32
    %c0_i32_1 = arith.constant 0 : i32
    return %c0_i32, %c0_i32_0 : i32, i32
  }
  func.func @transform_1(%arg0: i32) -> (i32, i32) {
    %c0_i32 = arith.constant 0 : i32
    %c0_i32_0 = arith.constant 0 : i32
    return %c0_i32, %arg0 : i32, i32
  }
  func.func @transform_2(%arg0: i32) -> (i32, i32) {
    %c0_i32 = arith.constant 0 : i32
    %c0_i32_0 = arith.constant 0 : i32
    return %c0_i32, %arg0 : i32, i32
  }
  func.func @transform_3(%arg0: i32) -> (i32, i32) {
    %c0_i32 = arith.constant 0 : i32
    %c0_i32_0 = arith.constant 0 : i32
    return %c0_i32, %arg0 : i32, i32
  }
}

</mosaic_0001>

<bundles_post_ra>
// kernel: modulation_forward.1
= control target key start
LH: loop header
LB: loop body
LE: loop exit
PB: predicated region body
PF: predicated region fallthrough
CT: control target
= control target key end

     0   :  { %8 = vsyncpa [#allocation3], 0  ;;  %s237_s0 = inlined_call_operand.hbm [shape: f32[2,32], index: 0, kind: input, shape index: {}]   ;;  %s238_s1 = inlined_call_operand.hbm [shape: f32[32,192], index: 1, kind: input, shape index: {}]   ;;  %s239_s2 = inlined_call_operand.vmem [shape: f32[1,192], index: 2, kind: input, shape index: {}]   ;;  %s240_s3 = inlined_call_operand.vmem [shape: f32[2,192], index: 3, kind: output, shape index: {}]  }
   0x1   :  { %s15_s14 = sshll.u32 %s237_s0, 4  ;;  %s16_s14 = int_to_ptr.hbm [resolvable:$true] %s15_s14 }
   0x2   :  { %9 = vsyncpa [#allocation5], 0  ;;  %s201_s15 = smov [#allocation2]   ;;  %s25_s19 = sshll.u32 %s238_s1, 4  ;;  %s26_s19 = int_to_ptr.hbm [resolvable:$true] %s25_s19 }
   0x3   :  { %s17_s16 = sshll.u32 %s201_s15, 4  ;;  %s202_s20 = smov [#allocation4]   ;;  %s18_s16 = int_to_ptr.vmem [resolvable:$true] %s17_s16 }
   0x4   :  { %20 = dma.hbm_to_vmem [thread:$0]  %s16_s14, 32, %s18_s16, [#allocation3]  }
   0x5   :  { %s27_s21 = sshll.u32 %s202_s20, 4  ;;  %s203_s22 = smov 256   ;;  %s28_s21 = int_to_ptr.vmem [resolvable:$true] %s27_s21 }
   0x6   :  { %s204_s23 = smov 16  }
   0x7   :  { %33 = dma.hbm_to_vmem [thread:$0]  %s26_s19, 1024, %s28_s21, [#allocation5], %s203_s22, %s203_s22, %s204_s23  }
   0x8   :  { %197 = dma.done.wait [#allocation3], 32  }
   0x9   :  { %198 = vsyncadd [#allocation3], 4294967264 }
   0xa   :  { %199 = dma.done.wait [#allocation5], 1024  }
   0xb   :  { %200 = vsyncadd [#allocation5], 4294966272  ;;  %v72_v0 = vld [vmem:[#allocation4 + $0x38] sm:$0xff]  ;;  %v71_v1 = vld [vmem:[#allocation4 + $0x30] sm:$0xff]  ;;  %vm79_vm4 = vcmask 261120   ;;  %vm126_vm5 = vcmask 1041408  }
   0xc   :  { %v70_v2 = vld [vmem:[#allocation4 + $0x28] sm:$0xff]  ;;  %115 = vmatpush.msra.mxu1 %v72_v0  ;;  %95 = vmatpush.msra.mxu0 %v71_v1  ;;  %v69_v3 = vld [vmem:[#allocation4 + $0x20] sm:$0xff]  ;;  %v68_v4 = vld [vmem:[#allocation4 + $0x18] sm:$0xff]  ;;  %vm129_vm6 = vcmask 519170  }
   0xd   :  { %v67_v5 = vld [vmem:[#allocation4 + $0x10] sm:$0xff]  ;;  %v44_v6 = vld [vmem:[#allocation2] sm:$0x3]  ;;  %v66_v8 = vld [vmem:[#allocation4 + $0x8] sm:$0xff] }
   0xe   :  { %116 = vmatpush.msra.mxu1 %v70_v2  ;;  %96 = vmatpush.msra.mxu0 %v69_v3  ;;  %v138_v7 = vmul.f32 -1.442695, %v44_v6  ;;  %v65_v9 = vld [vmem:[#allocation4] sm:$0xff]  ;;  %v73_v23 = vld [vmem:[%s239_s2] sm:$0x3]  ;;  %vm130_vm7 = vmor %vm129_vm6, %vm126_vm5 }
   0xf   :  { %v76_v24 = vperm.slane %v73_v23, 1  ;;  %v75_v25 = vperm.slane %v73_v23, 0 }
  0x10   :  { %117 = vmatpush.msra.mxu1 %v68_v4  ;;  %97 = vmatpush.msra.mxu0 %v67_v5  ;;  %145 = vpow2.f32 %v138_v7 }
  0x12   :  { %118 = vmatpush.msra.mxu1 %v66_v8  ;;  %98 = vmatpush.msra.mxu0 %v65_v9 }
  0x16   :  { %v146_v10 = vpop.eup %145 }
  0x17   :  { %v48_v11 = vadd.f32 1.0, %v146_v10 }
  0x19   :  { %147 = vrcp.f32 %v48_v11  ;;  %v60_v14 = vand.u32 2147483648, %v48_v11  ;;  %vm54_vm0 = vweird.f32 %v48_v11  ;;  %v58_v16 = vand.u32 2147483647, %v48_v11 }
  0x1b   :  { %v61_v18 = vor.u32 1.1754944e-38, %v60_v14  ;;  %vm59_vm3 = vcmp.eq.f32.partialorder %v58_v16, 8.507059e+37 }
  0x1f   :  { %v148_v12 = vpop.eup %147 }
  0x20   :  { %v50_v13 = vmul.f32 %v148_v12, %v48_v11  ;;  %vm55_vm1 = vweird.f32 %v148_v12 }
  0x21   :  { %vm56_vm2 = vmor %vm54_vm0, %vm55_vm1 }
  0x22   :  { %v51_v15 = vsub.f32 1.0, %v50_v13 }
  0x24   :  { %v52_v17 = vmul.f32 %v148_v12, %v51_v15 }
  0x26   :  { %v53_v19 = vadd.f32 %v148_v12, %v52_v17 }
  0x28   :  { %v57_v20 = vsel %vm56_vm2, %v148_v12, %v53_v19 }
  0x29   :  { %v62_v21 = vsel %vm59_vm3, %v61_v18, %v57_v20 }
  0x2a   :  { %v64_v22 = vmul.f32 %v62_v21, %v44_v6 }
  0x2c   :  { %140 = vmatmul.msk.f32.vlgmr.msra.gmra.mxu1 %vm79_vm4, %v64_v22  ;;  %139 = vmatmul.msk.f32.vlgmr.msra.gmra.mxu0 %vm79_vm4, %v64_v22 }
  0xa9   :  { %v120_v26 = vpop.f32.mrf.mxu1  ;;  %v100_v27 = vpop.f32.mrf.mxu0 }
  0xaa   :  { %v121_v28 = vadd.f32 %v120_v26, %v76_v24  ;;  %v101_v29 = vadd.f32 %v100_v27, %v75_v25 }
  0xac   :  { %v125_v30 = vrot.slane %v121_v28, 6 }
  0xae   :  { %v127_v31 = vsel %vm126_vm5, %v101_v29, %v125_v30 }
  0xaf   :  { %131 = vst.msk [vmem:[%s240_s3] sm:$0xf] %vm130_vm7, %v127_v31 }
  0xb0   :  { %136 = vsyncpa [#allocation3], 1 }
  0xb1   :  { %137 = vsyncpa [#allocation5], 1 }

</bundles_post_ra>
